<compile_context>
chip_gen: v7x
topology: tpu7x:2x2x1
jax: 0.10.0
libtpu: 0.0.40
codegen_flags: <defaults>
</compile_context>

<pallas_src>
import functools
import math

import numpy as np
import jax
import jax.numpy as jnp
from jax import lax
from jax.experimental import pallas as pl
from jax.experimental.pallas import tpu as pltpu


def _round_up(x, m):
    return (x + m - 1) // m * m


def _lstm_kernel(x_ref, wih_ref, whh_ref, b_ref, wfc_ref, bfc_ref,
                 out_ref, h_ref, c_ref, gx_ref, *,
                 t_chunk, b_tile, gate_w, t_total, mask_tail, mxu_dtype):
    """One (batch-tile, time-chunk) grid step.

    x_ref   : (t_chunk, b_tile, F)     time-major input chunk (mxu_dtype)
    wih_ref : (F, Gtot)                input->gates, order (i, f, o, g); i/f/o columns pre-scaled
                                       by 0.5 (sigmoid-via-tanh); zero padded to Gtot lanes
    whh_ref : (gate_w, Gtot)           hidden->gates, same packing
    b_ref   : (1, Gtot)                b_ih + b_hh, same packing (f32)
    wfc_ref : (gate_w, Op)             final Linear weight (pre-transposed, zero padded)
    bfc_ref : (1, Op)                  final Linear bias
    out_ref : (b_tile, Op)             output (written at the last time chunk only)
    h_ref, c_ref : (b_tile, gate_w)    VMEM scratch hidden/cell state (persists across chunks)
    gx_ref  : (t_chunk*b_tile, Gtot)   VMEM scratch for the precomputed input projection (f32)
    """
    tc = pl.program_id(1)
    gw = gate_w

    @pl.when(tc == 0)
    def _():
        h_ref[...] = jnp.zeros_like(h_ref)
        c_ref[...] = jnp.zeros_like(c_ref)

    # ---- Prologue: input projection for the whole chunk in ONE matmul, off the serial path.
    # (t_chunk, b_tile, F) -> (t_chunk*b_tile, F) is layout-preserving (b_tile is a sublane
    # multiple), so this is a single MXU push; result kept in f32 in VMEM scratch.
    F = x_ref.shape[2]
    x2d = x_ref[...].reshape(t_chunk * b_tile, F)
    gx_ref[...] = (
        jnp.dot(x2d, wih_ref[...], preferred_element_type=jnp.float32) + b_ref[...]
    )

    # ---- Serial recurrence: only h @ W_hh + elementwise per step.
    whh = whh_ref[...]                      # mxu_dtype, hoisted out of the loop

    def step(t, carry):
        h, c = carry
        base = pl.multiple_of(t * b_tile, b_tile)
        gx = gx_ref[pl.ds(base, b_tile), :]
        gates = gx + jnp.dot(h.astype(mxu_dtype), whh,
                             preferred_element_type=jnp.float32)
        # i/f/o preactivations were pre-scaled by 0.5 in the wrapper:
        # sigmoid(x) = 0.5*tanh(x/2) + 0.5  -> one tanh over the i|f|o lanes.
        t_ifo = jnp.tanh(gates[:, 0:3 * gw])
        i_g = 0.5 * t_ifo[:, 0 * gw:1 * gw] + 0.5
        f_g = 0.5 * t_ifo[:, 1 * gw:2 * gw] + 0.5
        o_g = 0.5 * t_ifo[:, 2 * gw:3 * gw] + 0.5
        g_g = jnp.tanh(gates[:, 3 * gw:4 * gw])
        c_new = f_g * c + i_g * g_g
        h_new = o_g * jnp.tanh(c_new)
        if mask_tail:
            # Padded tail timesteps (global step >= T): carry state through unchanged.
            m = ((tc * t_chunk + t) < t_total).astype(jnp.float32)
            h_new = m * h_new + (1.0 - m) * h
            c_new = m * c_new + (1.0 - m) * c
        return h_new, c_new

    h, c = lax.fori_loop(0, t_chunk, step, (h_ref[...], c_ref[...]), unroll=True)
    h_ref[...] = h
    c_ref[...] = c

    # ---- Head at the last chunk: forecast = relu(z[:, -1, :]); dropout = identity (eval).
    @pl.when(tc == pl.num_programs(1) - 1)
    def _():
        forecast = jnp.maximum(h, 0.0)
        out_ref[...] = (
            jnp.dot(forecast.astype(mxu_dtype), wfc_ref[...],
                    preferred_element_type=jnp.float32)
            + bfc_ref[...]
        ).astype(out_ref.dtype)


def lstm_model_forward(x_btf, params, *, max_t_chunk=16, mxu_dtype=jnp.bfloat16):
    """x_btf: (B, T, F) float32, PyTorch batch_first layout."""
    B, T, F = x_btf.shape
    w_ih, w_hh = params["w_ih"], params["w_hh"]          # (4H, F), (4H, H)
    b_ih, b_hh = params["b_ih"], params["b_hh"]          # (4H,), (4H,)
    w_fc, b_fc = params["w_fc"], params["b_fc"]          # (O, H), (O,)
    H = w_hh.shape[1]
    O = w_fc.shape[0]
    f32 = jnp.float32

    # ---- Gate packing geometry.
    # Small-H: all four gates packed into one 128-lane block (gate width = H).
    # Large-H: each gate zero-padded to a lane-aligned 128-multiple block.
    gw = H if 4 * H <= 128 else _round_up(H, 128)
    Gtot = _round_up(4 * gw, 128)
    Op = _round_up(O, 128)

    # ---- Batch tiling: sublane aligned, capped at 128 (MXU M width); >=2 tiles when the
    # padded batch is >=16 so the v7x megacore "parallel" axis has work for both cores.
    # (v6e could raise the cap to 256 for very large B — left at 128 for portability.)
    Bp8 = _round_up(B, 8)
    if Bp8 >= 16:
        b_tile = min(128, _round_up((Bp8 + 1) // 2, 8))
    else:
        b_tile = Bp8
    Bp = _round_up(Bp8, b_tile)
    n_b = Bp // b_tile

    # ---- Time chunking: fixed chunk, pad T up and mask the tail steps in-kernel.
    t_chunk = min(max_t_chunk, T)
    Tp = _round_up(T, t_chunk)
    n_t = Tp // t_chunk
    mask_tail = (Tp != T)

    # ---- Pack parameters: PyTorch gate order (i, f, g, o) -> kernel order (i, f, o, g),
    # i/f/o columns pre-scaled by 0.5 (sigmoid-via-tanh), zero padded.  Padded hidden units
    # stay exactly 0 through the recurrence (g = tanh(0) = 0 there).
    def pack_gate_matrix(w, K):
        wi, wf, wg, wo = w[0:H], w[H:2 * H], w[2 * H:3 * H], w[3 * H:4 * H]
        out = jnp.zeros((K, Gtot), f32)
        for k, (blk, s) in enumerate(((wi, 0.5), (wf, 0.5), (wo, 0.5), (wg, 1.0))):
            out = out.at[:, k * gw:k * gw + H].set(s * blk.T.astype(f32))
        return out

    wih_p = pack_gate_matrix(w_ih, F).astype(mxu_dtype)                       # (F, Gtot)
    whh_p = (jnp.zeros((gw, Gtot), f32)
             .at[:H, :].set(pack_gate_matrix(w_hh, H))).astype(mxu_dtype)     # (gw, Gtot)

    b_sum = (b_ih + b_hh).astype(f32)
    bi, bf_, bg, bo = b_sum[0:H], b_sum[H:2 * H], b_sum[2 * H:3 * H], b_sum[3 * H:4 * H]
    bias_p = jnp.zeros((1, Gtot), f32)
    for k, (blk, s) in enumerate(((bi, 0.5), (bf_, 0.5), (bo, 0.5), (bg, 1.0))):
        bias_p = bias_p.at[0, k * gw:k * gw + H].set(s * blk)

    wfc_p = (jnp.zeros((gw, Op), f32).at[:H, :O].set(w_fc.T.astype(f32))).astype(mxu_dtype)
    bfc_p = jnp.zeros((1, Op), f32).at[0, :O].set(b_fc.astype(f32))

    # ---- Time-major, padded input (mxu dtype halves the x DMA / VMEM in bf16 mode).
    x_tbf = jnp.transpose(x_btf, (1, 0, 2)).astype(mxu_dtype)                 # (T, B, F)
    if (Tp != T) or (Bp != B):
        x_tbf = jnp.pad(x_tbf, ((0, Tp - T), (0, Bp - B), (0, 0)))

    # ---- VMEM budget (double-buffered inputs/outputs, single scratch), with headroom.
    def buf_bytes(shape, dtype, nbuf=1):
        s = list(shape)
        s[-1] = _round_up(s[-1], 128)
        if len(s) >= 2:
            s[-2] = _round_up(s[-2], 8)
        return math.prod(s) * np.dtype(dtype).itemsize * nbuf

    vmem_needed = (
        buf_bytes((t_chunk, b_tile, F), mxu_dtype, 2)
        + buf_bytes((F, Gtot), mxu_dtype, 2)
        + buf_bytes((gw, Gtot), mxu_dtype, 2)
        + buf_bytes((1, Gtot), f32, 2)
        + buf_bytes((gw, Op), mxu_dtype, 2)
        + buf_bytes((1, Op), f32, 2)
        + buf_bytes((b_tile, Op), f32, 2)
        + 2 * buf_bytes((b_tile, gw), f32)
        + buf_bytes((t_chunk * b_tile, Gtot), f32)
    )
    vmem_limit = int(min(max(2 * vmem_needed, 16 << 20), 64 << 20))

    kernel = functools.partial(
        _lstm_kernel, t_chunk=t_chunk, b_tile=b_tile, gate_w=gw,
        t_total=T, mask_tail=mask_tail, mxu_dtype=mxu_dtype)

    out = pl.pallas_call(
        kernel,
        out_shape=jax.ShapeDtypeStruct((Bp, Op), f32),
        grid=(n_b, n_t),
        in_specs=[
            pl.BlockSpec((t_chunk, b_tile, F), lambda b, t: (t, b, 0)),
            pl.BlockSpec((F, Gtot), lambda b, t: (0, 0)),
            pl.BlockSpec((gw, Gtot), lambda b, t: (0, 0)),
            pl.BlockSpec((1, Gtot), lambda b, t: (0, 0)),
            pl.BlockSpec((gw, Op), lambda b, t: (0, 0)),
            pl.BlockSpec((1, Op), lambda b, t: (0, 0)),
        ],
        out_specs=pl.BlockSpec((b_tile, Op), lambda b, t: (b, 0)),
        scratch_shapes=[
            pltpu.VMEM((b_tile, gw), f32),                 # h state (persists across chunks)
            pltpu.VMEM((b_tile, gw), f32),                 # c state
            pltpu.VMEM((t_chunk * b_tile, Gtot), f32),     # precomputed gates_x for a chunk
        ],
        compiler_params=pltpu.CompilerParams(
            dimension_semantics=("parallel", "arbitrary"),
            vmem_limit_bytes=vmem_limit),
    )(x_tbf, wih_p, whh_p, bias_p, wfc_p, bfc_p)

    return out[:B, :O]


def _reference_forward(x_btf, params):
    """Pure-JAX reference mirroring the PyTorch forward (dropout in eval mode)."""
    B, T, F = x_btf.shape
    H = params["w_hh"].shape[1]
    h = jnp.zeros((B, H), jnp.float32)
    c = jnp.zeros((B, H), jnp.float32)
    for t in range(T):
        gates = (x_btf[:, t, :] @ params["w_ih"].T
                 + h @ params["w_hh"].T
                 + params["b_ih"] + params["b_hh"])
        i = jax.nn.sigmoid(gates[:, 0:H])
        f = jax.nn.sigmoid(gates[:, H:2 * H])
        g = jnp.tanh(gates[:, 2 * H:3 * H])
        o = jax.nn.sigmoid(gates[:, 3 * H:4 * H])
        c = f * c + i * g
        h = o * jnp.tanh(c)
    forecast = jnp.maximum(h, 0.0)
    return forecast @ params["w_fc"].T + params["b_fc"]


def init_params(key, in_size, latent_size, out_size):
    """Deterministic init, PyTorch-style uniform(-1/sqrt(H), 1/sqrt(H))."""
    H = latent_size
    k = 1.0 / jnp.sqrt(jnp.float32(H))
    keys = jax.random.split(key, 6)
    u = lambda kk, shape, bound: jax.random.uniform(
        kk, shape, jnp.float32, minval=-bound, maxval=bound)
    return {
        "w_ih": u(keys[0], (4 * H, in_size), k),
        "w_hh": u(keys[1], (4 * H, H), k),
        "b_ih": u(keys[2], (4 * H,), k),
        "b_hh": u(keys[3], (4 * H,), k),
        "w_fc": u(keys[4], (out_size, H), k),
        "b_fc": u(keys[5], (out_size,), k),
    }
    # TODO(synk): nn.Dropout(0.2) is modeled as identity (inference/eval mode);
    # LSTM dropout=0.2 is a no-op for num_layers=1 in PyTorch as well.


if __name__ == "__main__":
    B, T, in_size, latent_size, out_size = 4, 8, 8, 32, 16

    key = jax.random.PRNGKey(0)
    kx, kx2, kp = jax.random.split(key, 3)
    x = jax.random.normal(kx, (B, T, in_size), jnp.float32)
    params = init_params(kp, in_size, latent_size, out_size)
    ref = _reference_forward(x, params)

    # Default fast path: bf16 MXU operands, f32 state/accumulation.
    out = jax.block_until_ready(lstm_model_forward(x, params))
    assert out.shape == (B, out_size)
    assert jnp.allclose(out, ref, atol=3e-2, rtol=3e-2), "bf16-MXU mismatch vs reference"

    # Exactness check: f32 MXU operands.
    out_f32 = jax.block_until_ready(lstm_model_forward(x, params, mxu_dtype=jnp.float32))
    assert jnp.allclose(out_f32, ref, atol=1e-4, rtol=1e-4), "f32 mismatch vs reference"

    # Awkward T (not a multiple of the time chunk) + multi-tile batch: exercises the masked
    # tail steps and the 'parallel' batch axis (>=2 tiles).
    B2, T2 = 20, 10
    x2 = jax.random.normal(kx2, (B2, T2, in_size), jnp.float32)
    ref2 = _reference_forward(x2, params)
    out2 = jax.block_until_ready(
        lstm_model_forward(x2, params, max_t_chunk=4, mxu_dtype=jnp.float32))
    assert jnp.allclose(out2, ref2, atol=1e-4, rtol=1e-4), "tail-chunk mismatch vs reference"

    print("KERNEL_OK")
</pallas_src>

<mosaic_0001>
module attributes {stable_mosaic.version = 11 : i64} {
  func.func @_lstm_kernel(%arg0: i32, %arg1: i32, %arg2: memref<8x8x8xbf16, #tpu.memory_space<vmem>>, %arg3: memref<8x128xbf16, #tpu.memory_space<vmem>>, %arg4: memref<32x128xbf16, #tpu.memory_space<vmem>>, %arg5: memref<1x128xf32, #tpu.memory_space<vmem>>, %arg6: memref<32x128xbf16, #tpu.memory_space<vmem>>, %arg7: memref<1x128xf32, #tpu.memory_space<vmem>>, %arg8: memref<8x128xf32, #tpu.memory_space<vmem>>, %arg9: memref<8x32xf32, #tpu.memory_space<vmem>>, %arg10: memref<8x32xf32, #tpu.memory_space<vmem>>, %arg11: memref<64x128xf32, #tpu.memory_space<vmem>>) attributes {dimension_semantics = [#tpu.dimension_semantics<parallel>, #tpu.dimension_semantics<arbitrary>], iteration_bounds = array<i64: 1, 1>, scalar_prefetch = 0 : i64, scratch_operands = 3 : i64, tpu.core_type = #tpu.core_type<tc>, window_params = [{transform_indices = @transform_0, window_bounds = array<i64: 8, 8, 8>}, {pipeline_mode = #tpu.pipeline_mode<synchronous>, transform_indices = @transform_1, window_bounds = array<i64: 8, 128>}, {pipeline_mode = #tpu.pipeline_mode<synchronous>, transform_indices = @transform_2, window_bounds = array<i64: 32, 128>}, {pipeline_mode = #tpu.pipeline_mode<synchronous>, transform_indices = @transform_3, window_bounds = array<i64: 1, 128>}, {pipeline_mode = #tpu.pipeline_mode<synchronous>, transform_indices = @transform_4, window_bounds = array<i64: 32, 128>}, {pipeline_mode = #tpu.pipeline_mode<synchronous>, transform_indices = @transform_5, window_bounds = array<i64: 1, 128>}, {transform_indices = @transform_6, window_bounds = array<i64: 8, 128>}]} {
    %c0_i32 = arith.constant 0 : i32
    %0 = arith.cmpi eq, %arg1, %c0_i32 : i32
    %1 = arith.extui %0 : i1 to i32
    %c0_i32_0 = arith.constant 0 : i32
    %2 = arith.cmpi ne, %1, %c0_i32_0 : i32
    scf.if %2 {
      %cst_94 = arith.constant 0.000000e+00 : f32
      %267 = vector.broadcast %cst_94 : f32 to vector<8x32xf32>
      %c0_95 = arith.constant 0 : index
      %c0_96 = arith.constant 0 : index
      %268 = vector.load %arg9[%c0_95, %c0_96] : memref<8x32xf32, #tpu.memory_space<vmem>>, vector<8x32xf32>
      tpu.vector_store %arg9[%c0_95, %c0_96], %267 {strides = array<i32>} : memref<8x32xf32, #tpu.memory_space<vmem>>, vector<8x32xf32>,
      %cst_97 = arith.constant 0.000000e+00 : f32
      %269 = vector.broadcast %cst_97 : f32 to vector<8x32xf32>
      %c0_98 = arith.constant 0 : index
      %c0_99 = arith.constant 0 : index
      %270 = vector.load %arg10[%c0_98, %c0_99] : memref<8x32xf32, #tpu.memory_space<vmem>>, vector<8x32xf32>
      tpu.vector_store %arg10[%c0_98, %c0_99], %269 {strides = array<i32>} : memref<8x32xf32, #tpu.memory_space<vmem>>, vector<8x32xf32>,
    } else {
    }
    %c0 = arith.constant 0 : index
    %c0_1 = arith.constant 0 : index
    %c0_2 = arith.constant 0 : index
    %3 = vector.load %arg2[%c0, %c0_1, %c0_2] : memref<8x8x8xbf16, #tpu.memory_space<vmem>>, vector<8x8x8xbf16>
    %4 = vector.shape_cast %3 : vector<8x8x8xbf16> to vector<64x8xbf16>
    %c0_3 = arith.constant 0 : index
    %c0_4 = arith.constant 0 : index
    %5 = vector.load %arg3[%c0_3, %c0_4] : memref<8x128xbf16, #tpu.memory_space<vmem>>, vector<8x128xbf16>
    %cst = arith.constant dense<0.000000e+00> : vector<64x128xf32>
    %6 = tpu.matmul %4, %5, %cst {dimension_numbers = #tpu.dot_dimension_numbers<[1], [0], [0], [1], [0, 0, 1, 1], [], []>} : vector<64x8xbf16>, vector<8x128xbf16>, vector<64x128xf32> -> vector<64x128xf32>
    %c0_5 = arith.constant 0 : index
    %c0_6 = arith.constant 0 : index
    %7 = vector.load %arg5[%c0_5, %c0_6] : memref<1x128xf32, #tpu.memory_space<vmem>>, vector<1x128xf32>
    %8 = vector.broadcast %7 : vector<1x128xf32> to vector<64x128xf32>
    %9 = arith.addf %6, %8 : vector<64x128xf32>
    %c0_7 = arith.constant 0 : index
    %c0_8 = arith.constant 0 : index
    %10 = vector.load %arg11[%c0_7, %c0_8] : memref<64x128xf32, #tpu.memory_space<vmem>>, vector<64x128xf32>
    tpu.vector_store %arg11[%c0_7, %c0_8], %9 {strides = array<i32>} : memref<64x128xf32, #tpu.memory_space<vmem>>, vector<64x128xf32>,
    %c0_9 = arith.constant 0 : index
    %c0_10 = arith.constant 0 : index
    %11 = vector.load %arg4[%c0_9, %c0_10] : memref<32x128xbf16, #tpu.memory_space<vmem>>, vector<32x128xbf16>
    %c0_11 = arith.constant 0 : index
    %c0_12 = arith.constant 0 : index
    %12 = vector.load %arg9[%c0_11, %c0_12] : memref<8x32xf32, #tpu.memory_space<vmem>>, vector<8x32xf32>
    %c0_13 = arith.constant 0 : index
    %c0_14 = arith.constant 0 : index
    %13 = vector.load %arg10[%c0_13, %c0_14] : memref<8x32xf32, #tpu.memory_space<vmem>>, vector<8x32xf32>
    %c0_i32_15 = arith.constant 0 : i32
    %c8_i32 = arith.constant 8 : i32
    %14 = arith.muli %c0_i32_15, %c8_i32 : i32
    %15 = tpu.assume_multiple %14, 8 : i32
    %16 = arith.index_cast %15 : i32 to index
    %c0_16 = arith.constant 0 : index
    %17 = vector.load %arg11[%16, %c0_16] : memref<64x128xf32, #tpu.memory_space<vmem>>, vector<8x128xf32>
    %18 = arith.truncf %12 : vector<8x32xf32> to vector<8x32xbf16>
    %cst_17 = arith.constant dense<0.000000e+00> : vector<8x128xf32>
    %19 = tpu.matmul %18, %11, %cst_17 {dimension_numbers = #tpu.dot_dimension_numbers<[1], [0], [0], [1], [0, 0, 1, 1], [], []>} : vector<8x32xbf16>, vector<32x128xbf16>, vector<8x128xf32> -> vector<8x128xf32>
    %20 = arith.addf %17, %19 : vector<8x128xf32>
    %21 = vector.extract_strided_slice %20 {offsets = [0, 0], sizes = [8, 96], strides = [1, 1]} : vector<8x128xf32> to vector<8x96xf32>
    %22 = math.tanh %21 : vector<8x96xf32>
    %23 = vector.extract_strided_slice %22 {offsets = [0, 0], sizes = [8, 32], strides = [1, 1]} : vector<8x96xf32> to vector<8x32xf32>
    %cst_18 = arith.constant 5.000000e-01 : f32
    %24 = vector.broadcast %cst_18 : f32 to vector<8x32xf32>
    %25 = arith.mulf %24, %23 : vector<8x32xf32>
    %cst_19 = arith.constant 5.000000e-01 : f32
    %26 = vector.broadcast %cst_19 : f32 to vector<8x32xf32>
    %27 = arith.addf %25, %26 : vector<8x32xf32>
    %28 = vector.extract_strided_slice %22 {offsets = [0, 32], sizes = [8, 32], strides = [1, 1]} : vector<8x96xf32> to vector<8x32xf32>
    %cst_20 = arith.constant 5.000000e-01 : f32
    %29 = vector.broadcast %cst_20 : f32 to vector<8x32xf32>
    %30 = arith.mulf %29, %28 : vector<8x32xf32>
    %cst_21 = arith.constant 5.000000e-01 : f32
    %31 = vector.broadcast %cst_21 : f32 to vector<8x32xf32>
    %32 = arith.addf %30, %31 : vector<8x32xf32>
    %33 = vector.extract_strided_slice %22 {offsets = [0, 64], sizes = [8, 32], strides = [1, 1]} : vector<8x96xf32> to vector<8x32xf32>
    %cst_22 = arith.constant 5.000000e-01 : f32
    %34 = vector.broadcast %cst_22 : f32 to vector<8x32xf32>
    %35 = arith.mulf %34, %33 : vector<8x32xf32>
    %cst_23 = arith.constant 5.000000e-01 : f32
    %36 = vector.broadcast %cst_23 : f32 to vector<8x32xf32>
    %37 = arith.addf %35, %36 : vector<8x32xf32>
    %38 = vector.extract_strided_slice %20 {offsets = [0, 96], sizes = [8, 32], strides = [1, 1]} : vector<8x128xf32> to vector<8x32xf32>
    %39 = math.tanh %38 : vector<8x32xf32>
    %40 = arith.mulf %32, %13 : vector<8x32xf32>
    %41 = arith.mulf %27, %39 : vector<8x32xf32>
    %42 = arith.addf %40, %41 : vector<8x32xf32>
    %43 = math.tanh %42 : vector<8x32xf32>
    %44 = arith.mulf %37, %43 : vector<8x32xf32>
    %c1_i32 = arith.constant 1 : i32
    %c8_i32_24 = arith.constant 8 : i32
    %45 = arith.muli %c1_i32, %c8_i32_24 : i32
    %46 = tpu.assume_multiple %45, 8 : i32
    %47 = arith.index_cast %46 : i32 to index
    %c0_25 = arith.constant 0 : index
    %48 = vector.load %arg11[%47, %c0_25] : memref<64x128xf32, #tpu.memory_space<vmem>>, vector<8x128xf32>
    %49 = arith.truncf %44 : vector<8x32xf32> to vector<8x32xbf16>
    %cst_26 = arith.constant dense<0.000000e+00> : vector<8x128xf32>
    %50 = tpu.matmul %49, %11, %cst_26 {dimension_numbers = #tpu.dot_dimension_numbers<[1], [0], [0], [1], [0, 0, 1, 1], [], []>} : vector<8x32xbf16>, vector<32x128xbf16>, vector<8x128xf32> -> vector<8x128xf32>
    %51 = arith.addf %48, %50 : vector<8x128xf32>
    %52 = vector.extract_strided_slice %51 {offsets = [0, 0], sizes = [8, 96], strides = [1, 1]} : vector<8x128xf32> to vector<8x96xf32>
    %53 = math.tanh %52 : vector<8x96xf32>
    %54 = vector.extract_strided_slice %53 {offsets = [0, 0], sizes = [8, 32], strides = [1, 1]} : vector<8x96xf32> to vector<8x32xf32>
    %cst_27 = arith.constant 5.000000e-01 : f32
    %55 = vector.broadcast %cst_27 : f32 to vector<8x32xf32>
    %56 = arith.mulf %55, %54 : vector<8x32xf32>
    %cst_28 = arith.constant 5.000000e-01 : f32
    %57 = vector.broadcast %cst_28 : f32 to vector<8x32xf32>
    %58 = arith.addf %56, %57 : vector<8x32xf32>
    %59 = vector.extract_strided_slice %53 {offsets = [0, 32], sizes = [8, 32], strides = [1, 1]} : vector<8x96xf32> to vector<8x32xf32>
    %cst_29 = arith.constant 5.000000e-01 : f32
    %60 = vector.broadcast %cst_29 : f32 to vector<8x32xf32>
    %61 = arith.mulf %60, %59 : vector<8x32xf32>
    %cst_30 = arith.constant 5.000000e-01 : f32
    %62 = vector.broadcast %cst_30 : f32 to vector<8x32xf32>
    %63 = arith.addf %61, %62 : vector<8x32xf32>
    %64 = vector.extract_strided_slice %53 {offsets = [0, 64], sizes = [8, 32], strides = [1, 1]} : vector<8x96xf32> to vector<8x32xf32>
    %cst_31 = arith.constant 5.000000e-01 : f32
    %65 = vector.broadcast %cst_31 : f32 to vector<8x32xf32>
    %66 = arith.mulf %65, %64 : vector<8x32xf32>
    %cst_32 = arith.constant 5.000000e-01 : f32
    %67 = vector.broadcast %cst_32 : f32 to vector<8x32xf32>
    %68 = arith.addf %66, %67 : vector<8x32xf32>
    %69 = vector.extract_strided_slice %51 {offsets = [0, 96], sizes = [8, 32], strides = [1, 1]} : vector<8x128xf32> to vector<8x32xf32>
    %70 = math.tanh %69 : vector<8x32xf32>
    %71 = arith.mulf %63, %42 : vector<8x32xf32>
    %72 = arith.mulf %58, %70 : vector<8x32xf32>
    %73 = arith.addf %71, %72 : vector<8x32xf32>
    %74 = math.tanh %73 : vector<8x32xf32>
    %75 = arith.mulf %68, %74 : vector<8x32xf32>
    %c2_i32 = arith.constant 2 : i32
    %c8_i32_33 = arith.constant 8 : i32
    %76 = arith.muli %c2_i32, %c8_i32_33 : i32
    %77 = tpu.assume_multiple %76, 8 : i32
    %78 = arith.index_cast %77 : i32 to index
    %c0_34 = arith.constant 0 : index
    %79 = vector.load %arg11[%78, %c0_34] : memref<64x128xf32, #tpu.memory_space<vmem>>, vector<8x128xf32>
    %80 = arith.truncf %75 : vector<8x32xf32> to vector<8x32xbf16>
    %cst_35 = arith.constant dense<0.000000e+00> : vector<8x128xf32>
    %81 = tpu.matmul %80, %11, %cst_35 {dimension_numbers = #tpu.dot_dimension_numbers<[1], [0], [0], [1], [0, 0, 1, 1], [], []>} : vector<8x32xbf16>, vector<32x128xbf16>, vector<8x128xf32> -> vector<8x128xf32>
    %82 = arith.addf %79, %81 : vector<8x128xf32>
    %83 = vector.extract_strided_slice %82 {offsets = [0, 0], sizes = [8, 96], strides = [1, 1]} : vector<8x128xf32> to vector<8x96xf32>
    %84 = math.tanh %83 : vector<8x96xf32>
    %85 = vector.extract_strided_slice %84 {offsets = [0, 0], sizes = [8, 32], strides = [1, 1]} : vector<8x96xf32> to vector<8x32xf32>
    %cst_36 = arith.constant 5.000000e-01 : f32
    %86 = vector.broadcast %cst_36 : f32 to vector<8x32xf32>
    %87 = arith.mulf %86, %85 : vector<8x32xf32>
    %cst_37 = arith.constant 5.000000e-01 : f32
    %88 = vector.broadcast %cst_37 : f32 to vector<8x32xf32>
    %89 = arith.addf %87, %88 : vector<8x32xf32>
    %90 = vector.extract_strided_slice %84 {offsets = [0, 32], sizes = [8, 32], strides = [1, 1]} : vector<8x96xf32> to vector<8x32xf32>
    %cst_38 = arith.constant 5.000000e-01 : f32
    %91 = vector.broadcast %cst_38 : f32 to vector<8x32xf32>
    %92 = arith.mulf %91, %90 : vector<8x32xf32>
    %cst_39 = arith.constant 5.000000e-01 : f32
    %93 = vector.broadcast %cst_39 : f32 to vector<8x32xf32>
    %94 = arith.addf %92, %93 : vector<8x32xf32>
    %95 = vector.extract_strided_slice %84 {offsets = [0, 64], sizes = [8, 32], strides = [1, 1]} : vector<8x96xf32> to vector<8x32xf32>
    %cst_40 = arith.constant 5.000000e-01 : f32
    %96 = vector.broadcast %cst_40 : f32 to vector<8x32xf32>
    %97 = arith.mulf %96, %95 : vector<8x32xf32>
    %cst_41 = arith.constant 5.000000e-01 : f32
    %98 = vector.broadcast %cst_41 : f32 to vector<8x32xf32>
    %99 = arith.addf %97, %98 : vector<8x32xf32>
    %100 = vector.extract_strided_slice %82 {offsets = [0, 96], sizes = [8, 32], strides = [1, 1]} : vector<8x128xf32> to vector<8x32xf32>
    %101 = math.tanh %100 : vector<8x32xf32>
    %102 = arith.mulf %94, %73 : vector<8x32xf32>
    %103 = arith.mulf %89, %101 : vector<8x32xf32>
    %104 = arith.addf %102, %103 : vector<8x32xf32>
    %105 = math.tanh %104 : vector<8x32xf32>
    %106 = arith.mulf %99, %105 : vector<8x32xf32>
    %c3_i32 = arith.constant 3 : i32
    %c8_i32_42 = arith.constant 8 : i32
    %107 = arith.muli %c3_i32, %c8_i32_42 : i32
    %108 = tpu.assume_multiple %107, 8 : i32
    %109 = arith.index_cast %108 : i32 to index
    %c0_43 = arith.constant 0 : index
    %110 = vector.load %arg11[%109, %c0_43] : memref<64x128xf32, #tpu.memory_space<vmem>>, vector<8x128xf32>
    %111 = arith.truncf %106 : vector<8x32xf32> to vector<8x32xbf16>
    %cst_44 = arith.constant dense<0.000000e+00> : vector<8x128xf32>
    %112 = tpu.matmul %111, %11, %cst_44 {dimension_numbers = #tpu.dot_dimension_numbers<[1], [0], [0], [1], [0, 0, 1, 1], [], []>} : vector<8x32xbf16>, vector<32x128xbf16>, vector<8x128xf32> -> vector<8x128xf32>
    %113 = arith.addf %110, %112 : vector<8x128xf32>
    %114 = vector.extract_strided_slice %113 {offsets = [0, 0], sizes = [8, 96], strides = [1, 1]} : vector<8x128xf32> to vector<8x96xf32>
    %115 = math.tanh %114 : vector<8x96xf32>
    %116 = vector.extract_strided_slice %115 {offsets = [0, 0], sizes = [8, 32], strides = [1, 1]} : vector<8x96xf32> to vector<8x32xf32>
    %cst_45 = arith.constant 5.000000e-01 : f32
    %117 = vector.broadcast %cst_45 : f32 to vector<8x32xf32>
    %118 = arith.mulf %117, %116 : vector<8x32xf32>
    %cst_46 = arith.constant 5.000000e-01 : f32
    %119 = vector.broadcast %cst_46 : f32 to vector<8x32xf32>
    %120 = arith.addf %118, %119 : vector<8x32xf32>
    %121 = vector.extract_strided_slice %115 {offsets = [0, 32], sizes = [8, 32], strides = [1, 1]} : vector<8x96xf32> to vector<8x32xf32>
    %cst_47 = arith.constant 5.000000e-01 : f32
    %122 = vector.broadcast %cst_47 : f32 to vector<8x32xf32>
    %123 = arith.mulf %122, %121 : vector<8x32xf32>
    %cst_48 = arith.constant 5.000000e-01 : f32
    %124 = vector.broadcast %cst_48 : f32 to vector<8x32xf32>
    %125 = arith.addf %123, %124 : vector<8x32xf32>
    %126 = vector.extract_strided_slice %115 {offsets = [0, 64], sizes = [8, 32], strides = [1, 1]} : vector<8x96xf32> to vector<8x32xf32>
    %cst_49 = arith.constant 5.000000e-01 : f32
    %127 = vector.broadcast %cst_49 : f32 to vector<8x32xf32>
    %128 = arith.mulf %127, %126 : vector<8x32xf32>
    %cst_50 = arith.constant 5.000000e-01 : f32
    %129 = vector.broadcast %cst_50 : f32 to vector<8x32xf32>
    %130 = arith.addf %128, %129 : vector<8x32xf32>
    %131 = vector.extract_strided_slice %113 {offsets = [0, 96], sizes = [8, 32], strides = [1, 1]} : vector<8x128xf32> to vector<8x32xf32>
    %132 = math.tanh %131 : vector<8x32xf32>
    %133 = arith.mulf %125, %104 : vector<8x32xf32>
    %134 = arith.mulf %120, %132 : vector<8x32xf32>
    %135 = arith.addf %133, %134 : vector<8x32xf32>
    %136 = math.tanh %135 : vector<8x32xf32>
    %137 = arith.mulf %130, %136 : vector<8x32xf32>
    %c4_i32 = arith.constant 4 : i32
    %c8_i32_51 = arith.constant 8 : i32
    %138 = arith.muli %c4_i32, %c8_i32_51 : i32
    %139 = tpu.assume_multiple %138, 8 : i32
    %140 = arith.index_cast %139 : i32 to index
    %c0_52 = arith.constant 0 : index
    %141 = vector.load %arg11[%140, %c0_52] : memref<64x128xf32, #tpu.memory_space<vmem>>, vector<8x128xf32>
    %142 = arith.truncf %137 : vector<8x32xf32> to vector<8x32xbf16>
    %cst_53 = arith.constant dense<0.000000e+00> : vector<8x128xf32>
    %143 = tpu.matmul %142, %11, %cst_53 {dimension_numbers = #tpu.dot_dimension_numbers<[1], [0], [0], [1], [0, 0, 1, 1], [], []>} : vector<8x32xbf16>, vector<32x128xbf16>, vector<8x128xf32> -> vector<8x128xf32>
    %144 = arith.addf %141, %143 : vector<8x128xf32>
    %145 = vector.extract_strided_slice %144 {offsets = [0, 0], sizes = [8, 96], strides = [1, 1]} : vector<8x128xf32> to vector<8x96xf32>
    %146 = math.tanh %145 : vector<8x96xf32>
    %147 = vector.extract_strided_slice %146 {offsets = [0, 0], sizes = [8, 32], strides = [1, 1]} : vector<8x96xf32> to vector<8x32xf32>
    %cst_54 = arith.constant 5.000000e-01 : f32
    %148 = vector.broadcast %cst_54 : f32 to vector<8x32xf32>
    %149 = arith.mulf %148, %147 : vector<8x32xf32>
    %cst_55 = arith.constant 5.000000e-01 : f32
    %150 = vector.broadcast %cst_55 : f32 to vector<8x32xf32>
    %151 = arith.addf %149, %150 : vector<8x32xf32>
    %152 = vector.extract_strided_slice %146 {offsets = [0, 32], sizes = [8, 32], strides = [1, 1]} : vector<8x96xf32> to vector<8x32xf32>
    %cst_56 = arith.constant 5.000000e-01 : f32
    %153 = vector.broadcast %cst_56 : f32 to vector<8x32xf32>
    %154 = arith.mulf %153, %152 : vector<8x32xf32>
    %cst_57 = arith.constant 5.000000e-01 : f32
    %155 = vector.broadcast %cst_57 : f32 to vector<8x32xf32>
    %156 = arith.addf %154, %155 : vector<8x32xf32>
    %157 = vector.extract_strided_slice %146 {offsets = [0, 64], sizes = [8, 32], strides = [1, 1]} : vector<8x96xf32> to vector<8x32xf32>
    %cst_58 = arith.constant 5.000000e-01 : f32
    %158 = vector.broadcast %cst_58 : f32 to vector<8x32xf32>
    %159 = arith.mulf %158, %157 : vector<8x32xf32>
    %cst_59 = arith.constant 5.000000e-01 : f32
    %160 = vector.broadcast %cst_59 : f32 to vector<8x32xf32>
    %161 = arith.addf %159, %160 : vector<8x32xf32>
    %162 = vector.extract_strided_slice %144 {offsets = [0, 96], sizes = [8, 32], strides = [1, 1]} : vector<8x128xf32> to vector<8x32xf32>
    %163 = math.tanh %162 : vector<8x32xf32>
    %164 = arith.mulf %156, %135 : vector<8x32xf32>
    %165 = arith.mulf %151, %163 : vector<8x32xf32>
    %166 = arith.addf %164, %165 : vector<8x32xf32>
    %167 = math.tanh %166 : vector<8x32xf32>
    %168 = arith.mulf %161, %167 : vector<8x32xf32>
    %c5_i32 = arith.constant 5 : i32
    %c8_i32_60 = arith.constant 8 : i32
    %169 = arith.muli %c5_i32, %c8_i32_60 : i32
    %170 = tpu.assume_multiple %169, 8 : i32
    %171 = arith.index_cast %170 : i32 to index
    %c0_61 = arith.constant 0 : index
    %172 = vector.load %arg11[%171, %c0_61] : memref<64x128xf32, #tpu.memory_space<vmem>>, vector<8x128xf32>
    %173 = arith.truncf %168 : vector<8x32xf32> to vector<8x32xbf16>
    %cst_62 = arith.constant dense<0.000000e+00> : vector<8x128xf32>
    %174 = tpu.matmul %173, %11, %cst_62 {dimension_numbers = #tpu.dot_dimension_numbers<[1], [0], [0], [1], [0, 0, 1, 1], [], []>} : vector<8x32xbf16>, vector<32x128xbf16>, vector<8x128xf32> -> vector<8x128xf32>
    %175 = arith.addf %172, %174 : vector<8x128xf32>
    %176 = vector.extract_strided_slice %175 {offsets = [0, 0], sizes = [8, 96], strides = [1, 1]} : vector<8x128xf32> to vector<8x96xf32>
    %177 = math.tanh %176 : vector<8x96xf32>
    %178 = vector.extract_strided_slice %177 {offsets = [0, 0], sizes = [8, 32], strides = [1, 1]} : vector<8x96xf32> to vector<8x32xf32>
    %cst_63 = arith.constant 5.000000e-01 : f32
    %179 = vector.broadcast %cst_63 : f32 to vector<8x32xf32>
    %180 = arith.mulf %179, %178 : vector<8x32xf32>
    %cst_64 = arith.constant 5.000000e-01 : f32
    %181 = vector.broadcast %cst_64 : f32 to vector<8x32xf32>
    %182 = arith.addf %180, %181 : vector<8x32xf32>
    %183 = vector.extract_strided_slice %177 {offsets = [0, 32], sizes = [8, 32], strides = [1, 1]} : vector<8x96xf32> to vector<8x32xf32>
    %cst_65 = arith.constant 5.000000e-01 : f32
    %184 = vector.broadcast %cst_65 : f32 to vector<8x32xf32>
    %185 = arith.mulf %184, %183 : vector<8x32xf32>
    %cst_66 = arith.constant 5.000000e-01 : f32
    %186 = vector.broadcast %cst_66 : f32 to vector<8x32xf32>
    %187 = arith.addf %185, %186 : vector<8x32xf32>
    %188 = vector.extract_strided_slice %177 {offsets = [0, 64], sizes = [8, 32], strides = [1, 1]} : vector<8x96xf32> to vector<8x32xf32>
    %cst_67 = arith.constant 5.000000e-01 : f32
    %189 = vector.broadcast %cst_67 : f32 to vector<8x32xf32>
    %190 = arith.mulf %189, %188 : vector<8x32xf32>
    %cst_68 = arith.constant 5.000000e-01 : f32
    %191 = vector.broadcast %cst_68 : f32 to vector<8x32xf32>
    %192 = arith.addf %190, %191 : vector<8x32xf32>
    %193 = vector.extract_strided_slice %175 {offsets = [0, 96], sizes = [8, 32], strides = [1, 1]} : vector<8x128xf32> to vector<8x32xf32>
    %194 = math.tanh %193 : vector<8x32xf32>
    %195 = arith.mulf %187, %166 : vector<8x32xf32>
    %196 = arith.mulf %182, %194 : vector<8x32xf32>
    %197 = arith.addf %195, %196 : vector<8x32xf32>
    %198 = math.tanh %197 : vector<8x32xf32>
    %199 = arith.mulf %192, %198 : vector<8x32xf32>
    %c6_i32 = arith.constant 6 : i32
    %c8_i32_69 = arith.constant 8 : i32
    %200 = arith.muli %c6_i32, %c8_i32_69 : i32
    %201 = tpu.assume_multiple %200, 8 : i32
    %202 = arith.index_cast %201 : i32 to index
    %c0_70 = arith.constant 0 : index
    %203 = vector.load %arg11[%202, %c0_70] : memref<64x128xf32, #tpu.memory_space<vmem>>, vector<8x128xf32>
    %204 = arith.truncf %199 : vector<8x32xf32> to vector<8x32xbf16>
    %cst_71 = arith.constant dense<0.000000e+00> : vector<8x128xf32>
    %205 = tpu.matmul %204, %11, %cst_71 {dimension_numbers = #tpu.dot_dimension_numbers<[1], [0], [0], [1], [0, 0, 1, 1], [], []>} : vector<8x32xbf16>, vector<32x128xbf16>, vector<8x128xf32> -> vector<8x128xf32>
    %206 = arith.addf %203, %205 : vector<8x128xf32>
    %207 = vector.extract_strided_slice %206 {offsets = [0, 0], sizes = [8, 96], strides = [1, 1]} : vector<8x128xf32> to vector<8x96xf32>
    %208 = math.tanh %207 : vector<8x96xf32>
    %209 = vector.extract_strided_slice %208 {offsets = [0, 0], sizes = [8, 32], strides = [1, 1]} : vector<8x96xf32> to vector<8x32xf32>
    %cst_72 = arith.constant 5.000000e-01 : f32
    %210 = vector.broadcast %cst_72 : f32 to vector<8x32xf32>
    %211 = arith.mulf %210, %209 : vector<8x32xf32>
    %cst_73 = arith.constant 5.000000e-01 : f32
    %212 = vector.broadcast %cst_73 : f32 to vector<8x32xf32>
    %213 = arith.addf %211, %212 : vector<8x32xf32>
    %214 = vector.extract_strided_slice %208 {offsets = [0, 32], sizes = [8, 32], strides = [1, 1]} : vector<8x96xf32> to vector<8x32xf32>
    %cst_74 = arith.constant 5.000000e-01 : f32
    %215 = vector.broadcast %cst_74 : f32 to vector<8x32xf32>
    %216 = arith.mulf %215, %214 : vector<8x32xf32>
    %cst_75 = arith.constant 5.000000e-01 : f32
    %217 = vector.broadcast %cst_75 : f32 to vector<8x32xf32>
    %218 = arith.addf %216, %217 : vector<8x32xf32>
    %219 = vector.extract_strided_slice %208 {offsets = [0, 64], sizes = [8, 32], strides = [1, 1]} : vector<8x96xf32> to vector<8x32xf32>
    %cst_76 = arith.constant 5.000000e-01 : f32
    %220 = vector.broadcast %cst_76 : f32 to vector<8x32xf32>
    %221 = arith.mulf %220, %219 : vector<8x32xf32>
    %cst_77 = arith.constant 5.000000e-01 : f32
    %222 = vector.broadcast %cst_77 : f32 to vector<8x32xf32>
    %223 = arith.addf %221, %222 : vector<8x32xf32>
    %224 = vector.extract_strided_slice %206 {offsets = [0, 96], sizes = [8, 32], strides = [1, 1]} : vector<8x128xf32> to vector<8x32xf32>
    %225 = math.tanh %224 : vector<8x32xf32>
    %226 = arith.mulf %218, %197 : vector<8x32xf32>
    %227 = arith.mulf %213, %225 : vector<8x32xf32>
    %228 = arith.addf %226, %227 : vector<8x32xf32>
    %229 = math.tanh %228 : vector<8x32xf32>
    %230 = arith.mulf %223, %229 : vector<8x32xf32>
    %c7_i32 = arith.constant 7 : i32
    %c8_i32_78 = arith.constant 8 : i32
    %231 = arith.muli %c7_i32, %c8_i32_78 : i32
    %232 = tpu.assume_multiple %231, 8 : i32
    %233 = arith.index_cast %232 : i32 to index
    %c0_79 = arith.constant 0 : index
    %234 = vector.load %arg11[%233, %c0_79] : memref<64x128xf32, #tpu.memory_space<vmem>>, vector<8x128xf32>
    %235 = arith.truncf %230 : vector<8x32xf32> to vector<8x32xbf16>
    %cst_80 = arith.constant dense<0.000000e+00> : vector<8x128xf32>
    %236 = tpu.matmul %235, %11, %cst_80 {dimension_numbers = #tpu.dot_dimension_numbers<[1], [0], [0], [1], [0, 0, 1, 1], [], []>} : vector<8x32xbf16>, vector<32x128xbf16>, vector<8x128xf32> -> vector<8x128xf32>
    %237 = arith.addf %234, %236 : vector<8x128xf32>
    %238 = vector.extract_strided_slice %237 {offsets = [0, 0], sizes = [8, 96], strides = [1, 1]} : vector<8x128xf32> to vector<8x96xf32>
    %239 = math.tanh %238 : vector<8x96xf32>
    %240 = vector.extract_strided_slice %239 {offsets = [0, 0], sizes = [8, 32], strides = [1, 1]} : vector<8x96xf32> to vector<8x32xf32>
    %cst_81 = arith.constant 5.000000e-01 : f32
    %241 = vector.broadcast %cst_81 : f32 to vector<8x32xf32>
    %242 = arith.mulf %241, %240 : vector<8x32xf32>
    %cst_82 = arith.constant 5.000000e-01 : f32
    %243 = vector.broadcast %cst_82 : f32 to vector<8x32xf32>
    %244 = arith.addf %242, %243 : vector<8x32xf32>
    %245 = vector.extract_strided_slice %239 {offsets = [0, 32], sizes = [8, 32], strides = [1, 1]} : vector<8x96xf32> to vector<8x32xf32>
    %cst_83 = arith.constant 5.000000e-01 : f32
    %246 = vector.broadcast %cst_83 : f32 to vector<8x32xf32>
    %247 = arith.mulf %246, %245 : vector<8x32xf32>
    %cst_84 = arith.constant 5.000000e-01 : f32
    %248 = vector.broadcast %cst_84 : f32 to vector<8x32xf32>
    %249 = arith.addf %247, %248 : vector<8x32xf32>
    %250 = vector.extract_strided_slice %239 {offsets = [0, 64], sizes = [8, 32], strides = [1, 1]} : vector<8x96xf32> to vector<8x32xf32>
    %cst_85 = arith.constant 5.000000e-01 : f32
    %251 = vector.broadcast %cst_85 : f32 to vector<8x32xf32>
    %252 = arith.mulf %251, %250 : vector<8x32xf32>
    %cst_86 = arith.constant 5.000000e-01 : f32
    %253 = vector.broadcast %cst_86 : f32 to vector<8x32xf32>
    %254 = arith.addf %252, %253 : vector<8x32xf32>
    %255 = vector.extract_strided_slice %237 {offsets = [0, 96], sizes = [8, 32], strides = [1, 1]} : vector<8x128xf32> to vector<8x32xf32>
    %256 = math.tanh %255 : vector<8x32xf32>
    %257 = arith.mulf %249, %228 : vector<8x32xf32>
    %258 = arith.mulf %244, %256 : vector<8x32xf32>
    %259 = arith.addf %257, %258 : vector<8x32xf32>
    %260 = math.tanh %259 : vector<8x32xf32>
    %261 = arith.mulf %254, %260 : vector<8x32xf32>
    %c8_i32_87 = arith.constant 8 : i32
    %c0_88 = arith.constant 0 : index
    %c0_89 = arith.constant 0 : index
    %262 = vector.load %arg9[%c0_88, %c0_89] : memref<8x32xf32, #tpu.memory_space<vmem>>, vector<8x32xf32>
    tpu.vector_store %arg9[%c0_88, %c0_89], %261 {strides = array<i32>} : memref<8x32xf32, #tpu.memory_space<vmem>>, vector<8x32xf32>,
    %c0_90 = arith.constant 0 : index
    %c0_91 = arith.constant 0 : index
    %263 = vector.load %arg10[%c0_90, %c0_91] : memref<8x32xf32, #tpu.memory_space<vmem>>, vector<8x32xf32>
    tpu.vector_store %arg10[%c0_90, %c0_91], %259 {strides = array<i32>} : memref<8x32xf32, #tpu.memory_space<vmem>>, vector<8x32xf32>,
    %c0_i32_92 = arith.constant 0 : i32
    %264 = arith.cmpi eq, %arg1, %c0_i32_92 : i32
    %265 = arith.extui %264 : i1 to i32
    %c0_i32_93 = arith.constant 0 : i32
    %266 = arith.cmpi ne, %265, %c0_i32_93 : i32
    scf.if %266 {
      %cst_94 = arith.constant 0.000000e+00 : f32
      %267 = vector.broadcast %cst_94 : f32 to vector<8x32xf32>
      %268 = arith.maximumf %261, %267 : vector<8x32xf32>
      %269 = arith.truncf %268 : vector<8x32xf32> to vector<8x32xbf16>
      %c0_95 = arith.constant 0 : index
      %c0_96 = arith.constant 0 : index
      %270 = vector.load %arg6[%c0_95, %c0_96] : memref<32x128xbf16, #tpu.memory_space<vmem>>, vector<32x128xbf16>
      %cst_97 = arith.constant dense<0.000000e+00> : vector<8x128xf32>
      %271 = tpu.matmul %269, %270, %cst_97 {dimension_numbers = #tpu.dot_dimension_numbers<[1], [0], [0], [1], [0, 0, 1, 1], [], []>} : vector<8x32xbf16>, vector<32x128xbf16>, vector<8x128xf32> -> vector<8x128xf32>
      %c0_98 = arith.constant 0 : index
      %c0_99 = arith.constant 0 : index
      %272 = vector.load %arg7[%c0_98, %c0_99] : memref<1x128xf32, #tpu.memory_space<vmem>>, vector<1x128xf32>
      %273 = vector.broadcast %272 : vector<1x128xf32> to vector<8x128xf32>
      %274 = arith.addf %271, %273 : vector<8x128xf32>
      %c0_100 = arith.constant 0 : index
      %c0_101 = arith.constant 0 : index
      %275 = vector.load %arg8[%c0_100, %c0_101] : memref<8x128xf32, #tpu.memory_space<vmem>>, vector<8x128xf32>
      tpu.vector_store %arg8[%c0_100, %c0_101], %274 {strides = array<i32>} : memref<8x128xf32, #tpu.memory_space<vmem>>, vector<8x128xf32>,
    } else {
    }
    return
  }
  func.func @transform_0(%arg0: i32, %arg1: i32) -> (i32, i32, i32) {
    %c0_i32 = arith.constant 0 : i32
    %c0_i32_0 = arith.constant 0 : i32
    return %arg1, %arg0, %c0_i32 : i32, i32, i32
  }
  func.func @transform_1(%arg0: i32, %arg1: i32) -> (i32, i32) {
    %c0_i32 = arith.constant 0 : i32
    %c0_i32_0 = arith.constant 0 : i32
    %c0_i32_1 = arith.constant 0 : i32
    return %c0_i32, %c0_i32_0 : i32, i32
  }
  func.func @transform_2(%arg0: i32, %arg1: i32) -> (i32, i32) {
    %c0_i32 = arith.constant 0 : i32
    %c0_i32_0 = arith.constant 0 : i32
    %c0_i32_1 = arith.constant 0 : i32
    return %c0_i32, %c0_i32_0 : i32, i32
  }
  func.func @transform_3(%arg0: i32, %arg1: i32) -> (i32, i32) {
    %c0_i32 = arith.constant 0 : i32
    %c0_i32_0 = arith.constant 0 : i32
    %c0_i32_1 = arith.constant 0 : i32
    return %c0_i32, %c0_i32_0 : i32, i32
  }
  func.func @transform_4(%arg0: i32, %arg1: i32) -> (i32, i32) {
    %c0_i32 = arith.constant 0 : i32
    %c0_i32_0 = arith.constant 0 : i32
    %c0_i32_1 = arith.constant 0 : i32
    return %c0_i32, %c0_i32_0 : i32, i32
  }
  func.func @transform_5(%arg0: i32, %arg1: i32) -> (i32, i32) {
    %c0_i32 = arith.constant 0 : i32
    %c0_i32_0 = arith.constant 0 : i32
    %c0_i32_1 = arith.constant 0 : i32
    return %c0_i32, %c0_i32_0 : i32, i32
  }
  func.func @transform_6(%arg0: i32, %arg1: i32) -> (i32, i32) {
    %c0_i32 = arith.constant 0 : i32
    %c0_i32_0 = arith.constant 0 : i32
    return %arg0, %c0_i32 : i32, i32
  }
}

</mosaic_0001>

<bundles_post_ra>
// kernel: tpu_custom_call.1
= control target key start
LH: loop header
LB: loop body
LE: loop exit
PB: predicated region body
PF: predicated region fallthrough
CT: control target
= control target key end

     0   :  { %11 = vsyncpa [#allocation6], 0  ;;  %s1471_s0 = inlined_call_operand.hbm [shape: bf16[8,8,8], index: 0, kind: input, shape index: {}]   ;;  %s1472_s1 = inlined_call_operand.hbm [shape: bf16[8,128], index: 1, kind: input, shape index: {}]   ;;  %s1473_s2 = inlined_call_operand.hbm [shape: bf16[32,128], index: 2, kind: input, shape index: {}]   ;;  %s1474_s3 = inlined_call_operand.vmem [shape: f32[1,128], index: 3, kind: input, shape index: {}]   ;;  %s1475_s4 = inlined_call_operand.hbm [shape: bf16[32,128], index: 4, kind: input, shape index: {}]   ;;  %s1476_s5 = inlined_call_operand.vmem [shape: f32[1,128], index: 5, kind: input, shape index: {}]   ;;  %s1477_s6 = inlined_call_operand.hbm [shape: f32[8,128], index: 6, kind: output, shape index: {}]  }
   0x1   :  { %12 = vsyncpa [#allocation9], 0 }
   0x2   :  { %13 = vsyncpa [#allocation12], 0 }
   0x3   :  { %14 = vsyncpa [#allocation7], 0  ;;  %s1199_s21 = smov [#allocation8]   ;;  %s1200_s23 = smov [#allocation5]  }
   0x4   :  { %s33_s22 = sshll.u32 %s1199_s21, 4  ;;  %s20_s24 = sshll.u32 %s1200_s23, 4  ;;  %s34_s22 = int_to_ptr.vmem [resolvable:$true] %s33_s22  ;;  %s1245_s24 = int_to_ptr.vmem [resolvable:$true] %s20_s24 }
   0x5   :  { %s1081_s27 = scalar_lea.hbm %s1472_s1, 64 }
   0x6   :  { %p1082_p0 = scmp.ne.s32.totalorder %s1472_s1, %s1081_s27  ;;  %p1085_p1 = scmp.lt.u32.totalorder %s1081_s27, %s1472_s1 }
   0x8   :  { %p1087_p2 = pnand %p1085_p1, %p1082_p0 }
   0xa   :  { %1090 = shalt.err (!%p1087_p2)
}
   0xb   :  { %s1091_s8 = scalar_lea.vmem %s34_s22, 64  ;;  %p1096_p4 = scmp.lt.s32.totalorder %s34_s22, %s34_s22 }
   0xc   :  { %p1092_p3 = scmp.ne.s32.totalorder %s34_s22, %s1091_s8  ;;  %p1097_p5 = scmp.lt.s32.totalorder %s1091_s8, %s1091_s8 }
   0xe   :  { %p1098_p6 = por %p1097_p5, %p1096_p4 }
  0x10   :  { %p1099_p7 = pnand %p1098_p6, %p1092_p3 }
  0x12   :  { %1102 = shalt.err (!%p1099_p7)
}
  0x13   :  { %36 = dma.hbm_to_vmem [thread:$0]  %s1472_s1, 64, %s34_s22, [#allocation9]  }
  0x14   :  { %s1103_s13 = scalar_lea.hbm %s1471_s0, 512 }
  0x15   :  { %p1104_p8 = scmp.ne.s32.totalorder %s1471_s0, %s1103_s13  ;;  %p1107_p9 = scmp.lt.u32.totalorder %s1103_s13, %s1471_s0 }
  0x17   :  { %p1109_p10 = pnand %p1107_p9, %p1104_p8 }
  0x19   :  { %1112 = shalt.err (!%p1109_p10)
}
  0x1a   :  { %s1113_s18 = scalar_lea.vmem %s1245_s24, 512  ;;  %p1118_p12 = scmp.lt.s32.totalorder %s1245_s24, %s1245_s24 }
  0x1b   :  { %p1114_p11 = scmp.ne.s32.totalorder %s1245_s24, %s1113_s18  ;;  %p1119_p13 = scmp.lt.s32.totalorder %s1113_s18, %s1113_s18 }
  0x1d   :  { %p1120_p0 = por %p1119_p13, %p1118_p12 }
  0x1f   :  { %p1121_p1 = pnand %p1120_p0, %p1114_p11 }
  0x21   :  { %1124 = shalt.err (!%p1121_p1)
}
  0x22   :  { %s1201_s1 = smov 64   ;;  %s1202_s19 = smov 4  }
  0x23   :  { %26 = dma.hbm_to_vmem [thread:$0]  %s1471_s0, 512, %s1245_s24, [#allocation6], %s1201_s1, %s1201_s1, %s1202_s19  }
  0x24   :  { %s1203_s22 = smov [#allocation10]   ;;  %s1204_s25 = smov [#allocation11]  }
  0x25   :  { %s42_s23 = sshll.u32 %s1203_s22, 4  ;;  %s56_s26 = sshll.u32 %s1204_s25, 4  ;;  %s43_s23 = int_to_ptr.vmem [resolvable:$true] %s42_s23  ;;  %s1279_s26 = int_to_ptr.vmem [resolvable:$true] %s56_s26 }
  0x26   :  { %s1125_s29 = scalar_lea.hbm %s1473_s2, 256 }
  0x27   :  { %p1126_p2 = scmp.ne.s32.totalorder %s1473_s2, %s1125_s29  ;;  %p1129_p3 = scmp.lt.u32.totalorder %s1125_s29, %s1473_s2 }
  0x29   :  { %p1131_p4 = pnand %p1129_p3, %p1126_p2 }
  0x2b   :  { %1134 = shalt.err (!%p1131_p4)
}
  0x2c   :  { %s1135_s0 = scalar_lea.vmem %s43_s23, 256  ;;  %p1140_p6 = scmp.lt.s32.totalorder %s43_s23, %s43_s23 }
  0x2d   :  { %p1136_p5 = scmp.ne.s32.totalorder %s43_s23, %s1135_s0  ;;  %p1141_p7 = scmp.lt.s32.totalorder %s1135_s0, %s1135_s0 }
  0x2f   :  { %p1142_p8 = por %p1141_p7, %p1140_p6 }
  0x31   :  { %p1143_p9 = pnand %p1142_p8, %p1136_p5 }
  0x33   :  { %1146 = shalt.err (!%p1143_p9)
}
  0x34   :  { %48 = dma.hbm_to_vmem [thread:$0]  %s1473_s2, 256, %s43_s23, [#allocation9], %s1201_s1, %s1201_s1, %s1202_s19  }
  0x35   :  { %s1147_s13 = scalar_lea.hbm %s1475_s4, 256 }
  0x36   :  { %p1148_p10 = scmp.ne.s32.totalorder %s1475_s4, %s1147_s13  ;;  %p1151_p11 = scmp.lt.u32.totalorder %s1147_s13, %s1475_s4 }
  0x38   :  { %p1153_p12 = pnand %p1151_p11, %p1148_p10 }
  0x3a   :  { %1156 = shalt.err (!%p1153_p12)
}
  0x3b   :  { %s1157_s18 = scalar_lea.vmem %s1279_s26, 256  ;;  %p1162_p0 = scmp.lt.s32.totalorder %s1279_s26, %s1279_s26 }
  0x3c   :  { %p1158_p13 = scmp.ne.s32.totalorder %s1279_s26, %s1157_s18  ;;  %p1163_p1 = scmp.lt.s32.totalorder %s1157_s18, %s1157_s18 }
  0x3e   :  { %p1164_p2 = por %p1163_p1, %p1162_p0 }
  0x40   :  { %p1165_p3 = pnand %p1164_p2, %p1158_p13 }
  0x42   :  { %1168 = shalt.err (!%p1165_p3)
}
  0x43   :  { %62 = dma.hbm_to_vmem [thread:$0]  %s1475_s4, 256, %s1279_s26, [#allocation12], %s1201_s1, %s1201_s1, %s1202_s19  }
  0x44   :  { %1191 = dma.done.wait [#allocation6], 512  }
  0x45   :  { %1192 = vsyncadd [#allocation6], 4294966784 }
  0x46   :  { %1193 = dma.done.wait [#allocation9], 320  }
  0x47   :  { %1194 = vsyncadd [#allocation9], 4294966976 }
  0x48   :  { %1195 = dma.done.wait [#allocation12], 256  }
  0x49   :  { %1196 = vsyncadd [#allocation12], 4294967040  ;;  %v1205_v0 = vmov 0.0   ;;  %vm1206_vm0 = vmmov 0   ;;  %vm82_vm1 = vcmask 261120   ;;  %vm134_vm2 = vcmask 1043456  }
  0x4a   :  { %957 = vmatprep.subr.bf16.mxu1 %v1205_v0  ;;  %961 = vmatprep.mubr.msk.bf16.mxu1 %vm1206_vm0, %v1205_v0  ;;  %83 = vst.msk [vmem:[#allocation2] sm:$0xff] %vm82_vm1, %v1205_v0  ;;  %84 = vst.msk [vmem:[#allocation3] sm:$0xff] %vm82_vm1, %v1205_v0  ;;  %vm121_vm3 = vcmask 64512   ;;  %v93_v1 = vld [vmem:[#allocation8] sm:$0xf]  ;;  %v1323_v3 = vld [vmem:[#allocation10] sm:$0xff]  }
  0x4b   :  { %1029 = vmatprep.subr.msk.bf16.mxu0 %vm134_vm2, %v93_v1  ;;  %v136_v2 = vsel %vm134_vm2, %v93_v1, 0  ;;  %v1042_v4 = vld [vmem:[#allocation5] sm:$0xff]   ;;  %958 = vmatpush3.bf16.msra.mxu1 %v1323_v3  ;;  %v1043_v5 = vld [vmem:[#allocation5 + $0x8] sm:$0xff]   ;;  %v1348_v9 = vld [vmem:[%s1474_s3] ss:$0 sm:$0xff]  ;;  %s1207_s21 = smov 32  }
  0x4c   :  { %948 = vmatpush3.bf16.msra.mxu0 %v136_v2  ;;  %949 = vmatprep.mubr.msk.bf16.mxu0 %vm121_vm3, %v1042_v4  ;;  %v1329_v6 = vld [vmem:[#allocation10 + $0x8] sm:$0xff]   ;;  %v1046_v50 = vld [vmem:[#allocation5 + $0x18] sm:$0xff]   ;;  %s1208_s3 = smov 96   ;;  %s1209_s25 = smov [#allocation13]  }
  0x4d   :  { %973 = vmatprep.subr.bf16.mxu0 %v1205_v0  ;;  %959 = vmatprep.subr.bf16.mxu1 %v1205_v0  ;;  %v1045_v49 = vld [vmem:[#allocation5 + $0x10] sm:$0xff]   ;;  %s881_s26 = sshll.u32 %s1209_s25, 4  ;;  %s882_s26 = int_to_ptr.vmem [resolvable:$true] %s881_s26 }
  0x4e   :  { %p1174_p5 = scmp.lt.s32.totalorder %s882_s26, %s882_s26 }
  0x4f   :  { %950 = vmatmul.mubr.msk.bf16.vlgmr.msra.gmra.mrb[0].mxu0 %vm121_vm3, %v1043_v5  ;;  %960 = vmatpush3.bf16.msra.mxu1 %v1329_v6 }
  0x50   :  { %974 = vmatpush3.bf16.msra.mxu0 %v1323_v3  ;;  %965 = vmatprep.subr.bf16.mxu1 %v1205_v0 }
  0x51   :  { %v215_v7 = vld [vmem:[#allocation2] sm:$0xff]  ;;  %975 = vmatprep.subr.bf16.mxu0 %v1205_v0  ;;  %v216_v21 = vld [vmem:[#allocation3] sm:$0xff]  ;;  %953 = vmatprep.mubr.msk.bf16.mxu0 %vm121_vm3, %v1045_v49 }
  0x52   :  { %v218_v8 = vpack.c.bf16 %v215_v7, %v215_v7 }
  0x54   :  { %962 = vmatmul.mubr.msk.bf16.vlgmr.msra.gmra.mrb[0].mxu1 %vm82_vm1, %v218_v8  ;;  %976 = vmatpush3.bf16.msra.mxu0 %v1329_v6 }
  0x55   :  { %966 = vmatpush3.bf16.msra.mxu1 %v1323_v3  ;;  %969 = vmatprep.mubr.msk.bf16.mxu1 %vm1206_vm0, %v1205_v0 }
  0x56   :  { %967 = vmatprep.subr.bf16.mxu1 %v1205_v0  ;;  %989 = vmatprep.subr.bf16.mxu0 %v1205_v0 }
  0x57   :  { %954 = vmatmul.mubr.msk.bf16.gmra.mrb[4].mxu0 %vm121_vm3, %v1046_v50 }
  0x58   :  { %977 = vmatprep.mubr.msk.bf16.mxu0 %vm1206_vm0, %v1205_v0 }
  0x59   :  { %968 = vmatpush3.bf16.msra.mxu1 %v1329_v6 }
  0x5a   :  { %981 = vmatprep.subr.bf16.mxu1 %v1205_v0 }
 0x122   :  { %v1350_v10 = vpop.f32.mrb[0].mxu0 }
 0x123   :  { %v172_v11 = vpop.f32.mrb[1].mxu0  ;;  %v181_v60 = vadd.f32 %v1350_v10, %v1348_v9 }
 0x124   :  { %v173_v12 = vadd.f32 %v1348_v9, %v172_v11  ;;  %v1353_v13 = vpop.f32.mrb[2].mxu0 }
 0x125   :  { %v175_v14 = vpop.f32.mrb[3].mxu0 }
 0x126   :  { %v176_v35 = vadd.f32 %v1348_v9, %v175_v14 }
 0x127   :  { %v269_v15 = vpop.f32.mrb[0].mxu1 }
 0x128   :  { %v275_v16 = vadd.f32 %v269_v15, %v173_v12  ;;  %v963_v17 = vpop.f32.mrb[1].mxu1 }
 0x129   :  { %v272_v18 = vpop.f32.mrb[2].mxu1 }
 0x12a   :  { %1049 = vtanh.f32 %v275_v16  ;;  %v964_v19 = vpop.f32.mrb[3].mxu1  ;;  %v1376_v55 = vpop.f32.mrb[4].mxu0 }
 0x12b   :  { %v1378_v56 = vpop.f32.mrb[5].mxu0 }
 0x12c   :  { %v1380_v57 = vpop.f32.mrb[6].mxu0 }
 0x12d   :  { %v1382_v58 = vpop.f32.mrb[7].mxu0 }
 0x134   :  { %v1050_v20 = vpop.eup %1049 }
 0x135   :  { %285 = vrot.lane.b32.xlu0 %v1050_v20, %s1207_s21  ;;  %v277_v22 = vmul.f32 0.5, %v1050_v20  ;;  %v184_v20 = vadd.f32 %v1353_v13, %v1348_v9 }
 0x137   :  { %v278_v23 = vadd.f32 0.5, %v277_v22 }
 0x139   :  { %280 = vrot.lane.b32.xlu0 %v216_v21, %s1207_s21 }
 0x1a7   :  { %v286_v24 = vpop.permute.xlu0 %285 }
 0x1a8   :  { %v288_v25 = vmul.f32 %v286_v24, %v278_v23 }
 0x1aa   :  { %290 = vrot.lane.b32.xlu1 %v288_v25, %s1207_s21 }
 0x1ab   :  { %v281_v26 = vpop.permute.xlu0 %280 }
 0x1ac   :  { %v283_v27 = vmul.f32 %v281_v26, %v278_v23 }
 0x21c   :  { %v291_v28 = vpop.permute.xlu1 %290 }
 0x21d   :  { %v293_v29 = vadd.f32 %v291_v28, %v283_v27 }
 0x21f   :  { %1051 = vtanh.f32 %v293_v29 }
 0x229   :  { %v1052_v30 = vpop.eup %1051 }
 0x22a   :  { %296 = vrot.lane.b32.xlu1 %v1052_v30, %s1207_s21 }
 0x29c   :  { %v297_v31 = vpop.permute.xlu1 %296 }
 0x29d   :  { %v299_v32 = vmul.f32 %v297_v31, %v278_v23 }
 0x29f   :  { %v302_v33 = vpack.c.bf16 %v299_v32, %v299_v32 }
 0x2a1   :  { %304 = vrot.lane.b32.xlu0 %v302_v33, %s1201_s1 }
 0x313   :  { %v305_v34 = vpop.permute.xlu0 %304 }
 0x314   :  { %970 = vmatmul.mubr.msk.bf16.vlgmr.msra.gmra.mrb[4].mxu1 %vm82_vm1, %v305_v34 }
 0x315   :  { %982 = vmatpush3.bf16.msra.mxu1 %v1323_v3  ;;  %985 = vmatprep.mubr.msk.bf16.mxu1 %vm1206_vm0, %v1205_v0 }
 0x316   :  { %983 = vmatprep.subr.bf16.mxu1 %v1205_v0 }
 0x319   :  { %984 = vmatpush3.bf16.msra.mxu1 %v1329_v6 }
 0x31a   :  { %997 = vmatprep.subr.bf16.mxu1 %v1205_v0 }
 0x3e7   :  { %v343_v36 = vpop.f32.mrb[4].mxu1 }
 0x3e8   :  { %v349_v37 = vadd.f32 %v343_v36, %v176_v35  ;;  %v971_v38 = vpop.f32.mrb[5].mxu1 }
 0x3e9   :  { %v346_v39 = vpop.f32.mrb[6].mxu1  ;;  %v189_v38 = vadd.f32 %v1348_v9, %v1378_v56 }
 0x3ea   :  { %1053 = vtanh.f32 %v349_v37  ;;  %v972_v40 = vpop.f32.mrb[7].mxu1 }
 0x3f4   :  { %v1054_v41 = vpop.eup %1053 }
 0x3f5   :  { %355 = vrot.lane.b32.xlu1 %v1054_v41, %s1207_s21  ;;  %v351_v42 = vmul.f32 0.5, %v1054_v41 }
 0x3f7   :  { %v352_v43 = vadd.f32 0.5, %v351_v42 }
 0x3f9   :  { %v353_v46 = vmul.f32 %v352_v43, %v293_v29 }
 0x467   :  { %v356_v44 = vpop.permute.xlu1 %355 }
 0x468   :  { %v358_v45 = vmul.f32 %v356_v44, %v352_v43 }
 0x46a   :  { %360 = vrot.lane.b32.xlu0 %v358_v45, %s1207_s21 }
 0x4dc   :  { %v361_v47 = vpop.permute.xlu0 %360 }
 0x4dd   :  { %v363_v48 = vadd.f32 %v361_v47, %v353_v46 }
 0x4df   :  { %1055 = vtanh.f32 %v363_v48 }
 0x4e9   :  { %v1056_v51 = vpop.eup %1055 }
 0x4ea   :  { %366 = vrot.lane.b32.xlu1 %v1056_v51, %s1207_s21 }
 0x55c   :  { %v367_v52 = vpop.permute.xlu1 %366 }
 0x55d   :  { %v369_v53 = vmul.f32 %v367_v52, %v352_v43 }
 0x55f   :  { %v372_v54 = vpack.c.bf16 %v369_v53, %v369_v53 }
 0x561   :  { %374 = vrot.lane.b32.xlu0 %v372_v54, %s1201_s1 }
 0x5d3   :  { %v375_v59 = vpop.permute.xlu0 %374 }
 0x5d4   :  { %978 = vmatmul.mubr.msk.bf16.vlgmr.msra.gmra.mrb[8].mxu0 %vm82_vm1, %v375_v59 }
 0x5d5   :  { %990 = vmatpush3.bf16.msra.mxu0 %v1323_v3  ;;  %993 = vmatprep.mubr.msk.bf16.mxu0 %vm1206_vm0, %v1205_v0 }
 0x5d6   :  { %991 = vmatprep.subr.bf16.mxu0 %v1205_v0 }
 0x5d9   :  { %992 = vmatpush3.bf16.msra.mxu0 %v1329_v6 }
 0x5da   :  { %1005 = vmatprep.subr.bf16.mxu0 %v1205_v0 }
 0x6a7   :  { %v413_v61 = vpop.f32.mrb[8].mxu0 }
 0x6a8   :  { %v419_v62 = vadd.f32 %v413_v61, %v181_v60  ;;  %v979_v63 = vpop.f32.mrb[9].mxu0  ;;  %v192_v60 = vadd.f32 %v1348_v9, %v1382_v58 }
 0x6a9   :  { %v416_v1 = vpop.f32.mrb[10].mxu0 }
 0x6aa   :  { %1057 = vtanh.f32 %v419_v62  ;;  %v980_v2 = vpop.f32.mrb[11].mxu0 }
 0x6b4   :  { %v1058_v4 = vpop.eup %1057 }
 0x6b5   :  { %425 = vrot.lane.b32.xlu1 %v1058_v4, %s1207_s21  ;;  %v421_v5 = vmul.f32 0.5, %v1058_v4 }
 0x6b7   :  { %v422_v7 = vadd.f32 0.5, %v421_v5 }
 0x6b9   :  { %v423_v12 = vmul.f32 %v422_v7, %v363_v48 }
 0x727   :  { %v426_v8 = vpop.permute.xlu1 %425 }
 0x728   :  { %v428_v11 = vmul.f32 %v426_v8, %v422_v7 }
 0x72a   :  { %430 = vrot.lane.b32.xlu0 %v428_v11, %s1207_s21 }
 0x79c   :  { %v431_v14 = vpop.permute.xlu0 %430 }
 0x79d   :  { %v433_v15 = vadd.f32 %v431_v14, %v423_v12 }
 0x79f   :  { %1059 = vtanh.f32 %v433_v15 }
 0x7a9   :  { %v1060_v10 = vpop.eup %1059 }
 0x7aa   :  { %436 = vrot.lane.b32.xlu1 %v1060_v10, %s1207_s21 }
 0x81c   :  { %v437_v16 = vpop.permute.xlu1 %436 }
 0x81d   :  { %v439_v17 = vmul.f32 %v437_v16, %v422_v7 }
 0x81f   :  { %v442_v18 = vpack.c.bf16 %v439_v17, %v439_v17  ;;  %v197_v17 = vadd.f32 %v1376_v55, %v1348_v9 }
 0x821   :  { %444 = vrot.lane.b32.xlu0 %v442_v18, %s1201_s1 }
 0x893   :  { %v445_v19 = vpop.permute.xlu0 %444 }
 0x894   :  { %986 = vmatmul.mubr.msk.bf16.vlgmr.msra.gmra.mrb[8].mxu1 %vm82_vm1, %v445_v19 }
 0x895   :  { %998 = vmatpush3.bf16.msra.mxu1 %v1323_v3  ;;  %1001 = vmatprep.mubr.msk.bf16.mxu1 %vm1206_vm0, %v1205_v0 }
 0x896   :  { %999 = vmatprep.subr.bf16.mxu1 %v1205_v0 }
 0x899   :  { %1000 = vmatpush3.bf16.msra.mxu1 %v1329_v6 }
 0x89a   :  { %1013 = vmatprep.subr.bf16.mxu1 %v1205_v0 }
 0x967   :  { %v483_v21 = vpop.f32.mrb[8].mxu1 }
 0x968   :  { %v489_v22 = vadd.f32 %v483_v21, %v184_v20  ;;  %v987_v23 = vpop.f32.mrb[9].mxu1 }
 0x969   :  { %v486_v24 = vpop.f32.mrb[10].mxu1 }
 0x96a   :  { %1061 = vtanh.f32 %v489_v22  ;;  %v988_v25 = vpop.f32.mrb[11].mxu1 }
 0x974   :  { %v1062_v26 = vpop.eup %1061 }
 0x975   :  { %495 = vrot.lane.b32.xlu1 %v1062_v26, %s1207_s21  ;;  %v491_v27 = vmul.f32 0.5, %v1062_v26 }
 0x977   :  { %v492_v28 = vadd.f32 0.5, %v491_v27 }
 0x979   :  { %v493_v31 = vmul.f32 %v492_v28, %v433_v15 }
 0x9e7   :  { %v496_v29 = vpop.permute.xlu1 %495 }
 0x9e8   :  { %v498_v30 = vmul.f32 %v496_v29, %v492_v28 }
 0x9ea   :  { %500 = vrot.lane.b32.xlu0 %v498_v30, %s1207_s21 }
 0xa5c   :  { %v501_v32 = vpop.permute.xlu0 %500 }
 0xa5d   :  { %v503_v33 = vadd.f32 %v501_v32, %v493_v31 }
 0xa5f   :  { %1063 = vtanh.f32 %v503_v33 }
 0xa69   :  { %v1064_v13 = vpop.eup %1063 }
 0xa6a   :  { %506 = vrot.lane.b32.xlu1 %v1064_v13, %s1207_s21 }
 0xadc   :  { %v507_v34 = vpop.permute.xlu1 %506 }
 0xadd   :  { %v509_v35 = vmul.f32 %v507_v34, %v492_v28  ;;  %v200_v34 = vadd.f32 %v1380_v57, %v1348_v9  ;;  %v1047_v9 = vld [vmem:[#allocation11] sm:$0xff]  }
 0xadf   :  { %v512_v36 = vpack.c.bf16 %v509_v35, %v509_v35 }
 0xae1   :  { %514 = vrot.lane.b32.xlu0 %v512_v36, %s1201_s1 }
 0xb53   :  { %v515_v37 = vpop.permute.xlu0 %514 }
 0xb54   :  { %994 = vmatmul.mubr.msk.bf16.vlgmr.msra.gmra.mrb[12].mxu0 %vm82_vm1, %v515_v37 }
 0xb55   :  { %1006 = vmatpush3.bf16.msra.mxu0 %v1323_v3  ;;  %1009 = vmatprep.mubr.msk.bf16.mxu0 %vm1206_vm0, %v1205_v0 }
 0xb56   :  { %1007 = vmatprep.subr.bf16.mxu0 %v1205_v0 }
 0xb59   :  { %1008 = vmatpush3.bf16.msra.mxu0 %v1329_v6 }
 0xb5a   :  { %1021 = vmatprep.subr.bf16.mxu0 %v1205_v0 }
 0xc27   :  { %v553_v39 = vpop.f32.mrb[12].mxu0 }
 0xc28   :  { %v559_v40 = vadd.f32 %v553_v39, %v189_v38  ;;  %v995_v41 = vpop.f32.mrb[13].mxu0 }
 0xc29   :  { %v556_v42 = vpop.f32.mrb[14].mxu0 }
 0xc2a   :  { %1065 = vtanh.f32 %v559_v40  ;;  %v996_v43 = vpop.f32.mrb[15].mxu0 }
 0xc34   :  { %v1066_v44 = vpop.eup %1065 }
 0xc35   :  { %565 = vrot.lane.b32.xlu1 %v1066_v44, %s1207_s21  ;;  %v561_v45 = vmul.f32 0.5, %v1066_v44 }
 0xc37   :  { %v562_v46 = vadd.f32 0.5, %v561_v45 }
 0xc39   :  { %v563_v49 = vmul.f32 %v562_v46, %v503_v33 }
 0xca7   :  { %v566_v47 = vpop.permute.xlu1 %565 }
 0xca8   :  { %v568_v48 = vmul.f32 %v566_v47, %v562_v46 }
 0xcaa   :  { %570 = vrot.lane.b32.xlu0 %v568_v48, %s1207_s21  ;;  %v1048_v48 = vld [vmem:[#allocation11 + $0x8] sm:$0xff]  }
 0xd1c   :  { %v571_v50 = vpop.permute.xlu0 %570 }
 0xd1d   :  { %v573_v51 = vadd.f32 %v571_v50, %v563_v49 }
 0xd1f   :  { %1067 = vtanh.f32 %v573_v51 }
 0xd29   :  { %v1068_v52 = vpop.eup %1067 }
 0xd2a   :  { %576 = vrot.lane.b32.xlu1 %v1068_v52, %s1207_s21 }
 0xd9c   :  { %v577_v53 = vpop.permute.xlu1 %576 }
 0xd9d   :  { %v579_v54 = vmul.f32 %v577_v53, %v562_v46 }
 0xd9f   :  { %v582_v56 = vpack.c.bf16 %v579_v54, %v579_v54 }
 0xda1   :  { %584 = vrot.lane.b32.xlu0 %v582_v56, %s1201_s1 }
 0xe13   :  { %v585_v59 = vpop.permute.xlu0 %584 }
 0xe14   :  { %1002 = vmatmul.mubr.msk.bf16.vlgmr.msra.gmra.mrb[12].mxu1 %vm82_vm1, %v585_v59 }
 0xe15   :  { %1014 = vmatpush3.bf16.msra.mxu1 %v1323_v3  ;;  %1017 = vmatprep.mubr.msk.bf16.mxu1 %vm1206_vm0, %v1205_v0 }
 0xe16   :  { %1015 = vmatprep.subr.bf16.mxu1 %v1205_v0 }
 0xe19   :  { %1016 = vmatpush3.bf16.msra.mxu1 %v1329_v6 }
 0xee7   :  { %v623_v61 = vpop.f32.mrb[12].mxu1 }
 0xee8   :  { %v629_v62 = vadd.f32 %v623_v61, %v192_v60  ;;  %v1003_v63 = vpop.f32.mrb[13].mxu1 }
 0xee9   :  { %v626_v1 = vpop.f32.mrb[14].mxu1 }
 0xeea   :  { %1069 = vtanh.f32 %v629_v62  ;;  %v1004_v2 = vpop.f32.mrb[15].mxu1 }
 0xef4   :  { %v1070_v4 = vpop.eup %1069 }
 0xef5   :  { %635 = vrot.lane.b32.xlu1 %v1070_v4, %s1207_s21  ;;  %v631_v3 = vmul.f32 0.5, %v1070_v4 }
 0xef7   :  { %v632_v5 = vadd.f32 0.5, %v631_v3 }
 0xef9   :  { %v633_v11 = vmul.f32 %v632_v5, %v573_v51 }
 0xf67   :  { %v636_v7 = vpop.permute.xlu1 %635 }
 0xf68   :  { %v638_v8 = vmul.f32 %v636_v7, %v632_v5 }
 0xf6a   :  { %640 = vrot.lane.b32.xlu0 %v638_v8, %s1207_s21 }
 0xfdc   :  { %v641_v6 = vpop.permute.xlu0 %640 }
 0xfdd   :  { %v643_v12 = vadd.f32 %v641_v6, %v633_v11 }
 0xfdf   :  { %1071 = vtanh.f32 %v643_v12 }
 0xfe9   :  { %v1072_v58 = vpop.eup %1071 }
 0xfea   :  { %646 = vrot.lane.b32.xlu1 %v1072_v58, %s1207_s21 }
0x105c   :  { %v647_v14 = vpop.permute.xlu1 %646 }
0x105d   :  { %v649_v15 = vmul.f32 %v647_v14, %v632_v5 }
0x105f   :  { %v652_v10 = vpack.c.bf16 %v649_v15, %v649_v15 }
0x1061   :  { %654 = vrot.lane.b32.xlu0 %v652_v10, %s1201_s1 }
0x10d3   :  { %v655_v16 = vpop.permute.xlu0 %654 }
0x10d4   :  { %1010 = vmatmul.mubr.msk.bf16.vlgmr.msra.gmra.mrb[16].mxu0 %vm82_vm1, %v655_v16 }
0x10d5   :  { %1025 = vmatprep.mubr.msk.bf16.mxu0 %vm1206_vm0, %v1205_v0  ;;  %1022 = vmatpush3.bf16.msra.mxu0 %v1047_v9 }
0x10d6   :  { %1023 = vmatprep.subr.bf16.mxu0 %v1205_v0  ;;  %v911_v0 = vld [vmem:[%s1476_s5] ss:$0 sm:$0xff] }
0x10d9   :  { %1024 = vmatpush3.bf16.msra.mxu0 %v1048_v48 }
0x11a7   :  { %v693_v18 = vpop.f32.mrb[16].mxu0 }
0x11a8   :  { %v699_v19 = vadd.f32 %v693_v18, %v197_v17  ;;  %v1011_v20 = vpop.f32.mrb[17].mxu0 }
0x11a9   :  { %v696_v21 = vpop.f32.mrb[18].mxu0 }
0x11aa   :  { %1073 = vtanh.f32 %v699_v19  ;;  %v1012_v22 = vpop.f32.mrb[19].mxu0 }
0x11b4   :  { %v1074_v23 = vpop.eup %1073 }
0x11b5   :  { %705 = vrot.lane.b32.xlu1 %v1074_v23, %s1207_s21  ;;  %v701_v24 = vmul.f32 0.5, %v1074_v23 }
0x11b7   :  { %v702_v25 = vadd.f32 0.5, %v701_v24 }
0x11b9   :  { %v703_v28 = vmul.f32 %v702_v25, %v643_v12 }
0x1227   :  { %v706_v26 = vpop.permute.xlu1 %705 }
0x1228   :  { %v708_v27 = vmul.f32 %v706_v26, %v702_v25 }
0x122a   :  { %710 = vrot.lane.b32.xlu0 %v708_v27, %s1207_s21 }
0x129c   :  { %v711_v29 = vpop.permute.xlu0 %710 }
0x129d   :  { %v713_v30 = vadd.f32 %v711_v29, %v703_v28 }
0x129f   :  { %1075 = vtanh.f32 %v713_v30 }
0x12a9   :  { %v1076_v55 = vpop.eup %1075 }
0x12aa   :  { %716 = vrot.lane.b32.xlu1 %v1076_v55, %s1207_s21 }
0x131c   :  { %v717_v31 = vpop.permute.xlu1 %716 }
0x131d   :  { %v719_v32 = vmul.f32 %v717_v31, %v702_v25 }
0x131f   :  { %v722_v33 = vpack.c.bf16 %v719_v32, %v719_v32 }
0x1321   :  { %724 = vrot.lane.b32.xlu0 %v722_v33, %s1201_s1 }
0x1393   :  { %v725_v13 = vpop.permute.xlu0 %724 }
0x1394   :  { %1018 = vmatmul.mubr.msk.bf16.vlgmr.msra.gmra.mrb[16].mxu1 %vm82_vm1, %v725_v13 }
0x1467   :  { %v763_v35 = vpop.f32.mrb[16].mxu1 }
0x1468   :  { %v769_v36 = vadd.f32 %v763_v35, %v200_v34  ;;  %v1019_v37 = vpop.f32.mrb[17].mxu1 }
0x1469   :  { %v766_v38 = vpop.f32.mrb[18].mxu1 }
0x146a   :  { %1077 = vtanh.f32 %v769_v36  ;;  %v1020_v39 = vpop.f32.mrb[19].mxu1 }
0x1474   :  { %v1078_v40 = vpop.eup %1077 }
0x1475   :  { %775 = vrot.lane.b32.xlu1 %v1078_v40, %s1207_s21  ;;  %v771_v41 = vmul.f32 0.5, %v1078_v40 }
0x1477   :  { %v772_v42 = vadd.f32 0.5, %v771_v41 }
0x1479   :  { %v773_v45 = vmul.f32 %v772_v42, %v713_v30 }
0x14e7   :  { %v776_v43 = vpop.permute.xlu1 %775 }
0x14e8   :  { %v778_v44 = vmul.f32 %v776_v43, %v772_v42 }
0x14ea   :  { %780 = vrot.lane.b32.xlu0 %v778_v44, %s1207_s21 }
0x155c   :  { %v781_v46 = vpop.permute.xlu0 %780 }
0x155d   :  { %v783_v47 = vadd.f32 %v781_v46, %v773_v45 }
0x155f   :  { %1079 = vtanh.f32 %v783_v47 }
0x1569   :  { %v1080_v57 = vpop.eup %1079 }
0x156a   :  { %786 = vrot.lane.b32.xlu1 %v1080_v57, %s1207_s21 }
0x15dc   :  { %v787_v49 = vpop.permute.xlu1 %786 }
0x15dd   :  { %v789_v50 = vmul.f32 %v787_v49, %v772_v42 }
0x15df   :  { %791 = vrot.lane.b32.xlu1 %v789_v50, %s1201_s1  ;;  %v803_v51 = vmax.f32 %v789_v50, 0.0 }
0x15e1   :  { %v804_v52 = vpack.c.bf16 %v803_v51, %v803_v51 }
0x15e3   :  { %817 = vrot.lane.b32.xlu0 %v804_v52, %s1201_s1  ;;  %s1169_s1 = scalar_lea.vmem %s882_s26, 128 }
0x15e4   :  { %p1170_p4 = scmp.ne.s32.totalorder %s882_s26, %s1169_s1  ;;  %p1175_p6 = scmp.lt.s32.totalorder %s1169_s1, %s1169_s1 }
0x15e6   :  { %p1176_p7 = por %p1175_p6, %p1174_p5 }
0x15e7   :  { %796 = vrot.lane.b32.xlu0 %v783_v47, %s1208_s3 }
0x15e8   :  { %p1177_p8 = pnand %p1176_p7, %p1170_p4 }
0x1651   :  { %v792_v53 = vpop.permute.xlu1 %791 }
0x1652   :  { %794 = vst.msk [vmem:[#allocation2] sm:$0xff] %vm82_vm1, %v792_v53 }
0x1655   :  { %v818_v54 = vpop.permute.xlu0 %817 }
0x1656   :  { %1026 = vmatmul.mubr.msk.bf16.vlgmr.msra.gmra.mrb[20].mxu0 %vm82_vm1, %v818_v54 }
0x1659   :  { %v797_v56 = vpop.permute.xlu0 %796 }
0x165a   :  { %799 = vst.msk [vmem:[#allocation3] sm:$0xff] %vm82_vm1, %v797_v56 }
0x1729   :  { %v868_v59 = vpop.f32.mrb[20].mxu0 }
0x172a   :  { %v869_v60 = vadd.f32 %v911_v0, %v868_v59  ;;  %v1027_v61 = vpop.f32.mrb[21].mxu0 }
0x172b   :  { %v871_v62 = vpop.f32.mrb[22].mxu0 }
0x172c   :  { %874 = vst [vmem:[#allocation13] sm:$0xff] %v869_v60  ;;  %v1028_v63 = vpop.f32.mrb[23].mxu0 }
0x172d   :  { %1180 = shalt.err (!%p1177_p8)
}
0x172e   :  { %s1181_s5 = scalar_lea.hbm %s1477_s6, 128 }
0x172f   :  { %p1182_p9 = scmp.ne.s32.totalorder %s1477_s6, %s1181_s5  ;;  %p1185_p10 = scmp.lt.u32.totalorder %s1181_s5, %s1477_s6 }
0x1731   :  { %p1187_p11 = pnand %p1185_p10, %p1182_p9 }
0x1733   :  { %1190 = shalt.err (!%p1187_p11)
}
0x1734   :  { %884 = dma.vmem_to_hbm [thread:$0]  %s882_s26, 128, %s1477_s6, [#allocation7]  }
0x1735   :  { %1197 = dma.done.wait [#allocation7], 128  }
0x1736   :  { %1198 = vsyncadd [#allocation7], 4294967168 }
0x1737   :  { %888 = vsyncpa [#allocation6], 1 }
0x1738   :  { %889 = vsyncpa [#allocation9], 1 }
0x1739   :  { %890 = vsyncpa [#allocation12], 1 }
0x173a   :  { %891 = vsyncpa [#allocation7], 1 }

</bundles_post_ra>
